<compile_context>
chip_gen: v7x
topology: tpu7x:2x2x1
jax: 0.10.0
libtpu: 0.0.40
codegen_flags: <defaults>
</compile_context>

<pallas_src>
import math

import jax
import jax.numpy as jnp
import numpy as np
from jax import lax
from jax.experimental import pallas as pl
from jax.experimental.pallas import tpu as pltpu

EPS = 1e-6
VMEM_LIMIT_BYTES = 64 * 1024 * 1024          # conservative across v5e/v6e/v7x
ATTN_VMEM_BUDGET = 40 * 1024 * 1024          # target working set for Kernel C tiles


# ----------------------------------------------------------------------------
# Kernel A: per-channel sum / sum-of-squares over L, tiled reduction over L.
# Accumulates directly into the resident (1, C, 1) output blocks.
# ----------------------------------------------------------------------------
def gn_sums_kernel(x_ref, sum_ref, ssq_ref):
    @pl.when(pl.program_id(1) == 0)
    def _():
        sum_ref[...] = jnp.zeros_like(sum_ref)
        ssq_ref[...] = jnp.zeros_like(ssq_ref)

    x = x_ref[0]                                            # (C, tls) f32
    sum_ref[0] += jnp.sum(x, axis=1, keepdims=True)         # (C, 1)
    ssq_ref[0] += jnp.sum(x * x, axis=1, keepdims=True)     # (C, 1)


# ----------------------------------------------------------------------------
# Kernel B: fused GroupNorm affine (one FMA) + q/k/v projection (bf16 MXU).
# x arrives channel-major (C, tl); one in-kernel XLU transpose gives token-major h,
# then a single (tl, C) x (C, 3C) matmul produces q/k/v (token-major outputs).
# ----------------------------------------------------------------------------
def gn_qkv_kernel(x_ref, scale_ref, shift_ref, wqkv_ref, bqkv_ref,
                  q_ref, k_ref, v_ref):
    x_ct = x_ref[0]                                         # (C, tl) f32
    h_ct = x_ct * scale_ref[0] + shift_ref[0]               # fused GN affine
    h = jnp.transpose(h_ct).astype(jnp.bfloat16)            # (tl, C)  (XLU transpose)
    C = h.shape[1]
    qkv = jnp.dot(h, wqkv_ref[...],
                  preferred_element_type=jnp.float32) + bqkv_ref[...]   # (tl, 3C) f32
    q_ref[0] = qkv[:, :C].astype(jnp.bfloat16)     # 1/sqrt(C) already folded into Wq/bq
    k_ref[0] = qkv[:, C:2 * C].astype(jnp.bfloat16)
    v_ref[0] = qkv[:, 2 * C:].astype(jnp.bfloat16)


# ----------------------------------------------------------------------------
# Kernel C: flash attention + proj_out + residual.
# grid = (B, L//tq, L//tk); kv axis is the trailing "arbitrary" reduction axis.
# With tk == L the k/v block index is constant per batch -> K/V DMA'd once per batch.
# ----------------------------------------------------------------------------
def flash_attn_kernel(x_ref, q_ref, k_ref, v_ref, wp_ref, bp_ref, o_ref,
                      m_sc, l_sc, acc_sc):
    kj = pl.program_id(2)

    @pl.when(kj == 0)
    def _():
        m_sc[...] = jnp.full_like(m_sc, -jnp.inf)
        l_sc[...] = jnp.zeros_like(l_sc)
        acc_sc[...] = jnp.zeros_like(acc_sc)

    q = q_ref[0]                                            # (tq, C) bf16 (pre-scaled)
    k = k_ref[0]                                            # (tk, C) bf16
    # NT matmul: contract channel (lane) axes of both -> no transpose copy.
    s = lax.dot_general(q, k, dimension_numbers=(((1,), (1,)), ((), ())),
                        preferred_element_type=jnp.float32)             # (tq, tk) f32

    m_prev = m_sc[...]
    m_new = jnp.maximum(m_prev, jnp.max(s, axis=-1, keepdims=True))     # (tq, 1)
    alpha = jnp.exp(m_prev - m_new)
    p = jnp.exp(s - m_new)                                              # f32 (v5e-safe)
    l_sc[...] = alpha * l_sc[...] + jnp.sum(p, axis=-1, keepdims=True)
    acc_sc[...] = alpha * acc_sc[...] + jnp.dot(
        p.astype(jnp.bfloat16), v_ref[0], preferred_element_type=jnp.float32)
    m_sc[...] = m_new

    @pl.when(kj == pl.num_programs(2) - 1)
    def _():
        attn = (acc_sc[...] * pl.reciprocal(l_sc[...], approx=True)
                ).astype(jnp.bfloat16)                                  # (tq, C)
        # proj_out directly in channel-major: (C_out, tq) = Wp (C_out,C_in) . attn^T
        proj_ct = lax.dot_general(wp_ref[...], attn,
                                  dimension_numbers=(((1,), (1,)), ((), ())),
                                  preferred_element_type=jnp.float32)   # (C, tq) f32
        o_ref[0] = x_ref[0] + proj_ct + bp_ref[...]                     # residual in f32


# ----------------------------------------------------------------------------
# Tile selection / VMEM budgeting helpers
# ----------------------------------------------------------------------------
def _tile_candidates(L, step=128):
    """Valid tile sizes along L: multiples of `step` dividing L, plus L; descending."""
    cands = {L}
    for t in range(step, L, step):
        if L % t == 0:
            cands.add(t)
    return sorted(cands, reverse=True)


def _pick_tile(L, target, step=128):
    cands = _tile_candidates(L, step)
    fitting = [t for t in cands if t <= target]
    return fitting[0] if fitting else cands[-1]


def _attn_vmem_bytes(tq, tk, C):
    """Rough double-buffered VMEM working-set estimate for Kernel C."""
    db = 2
    b = 0
    b += db * C * tq * 4            # x residual block (f32)
    b += db * tq * C * 2            # q (bf16)
    b += 2 * db * tk * C * 2        # k, v (bf16)
    b += db * C * C * 2             # Wp (bf16)
    b += db * C * 4                 # bp
    b += db * C * tq * 4            # output block (f32)
    b += tq * C * 4 + 2 * tq * 4    # acc / m / l scratch
    b += 2 * tq * tk * 4            # score + prob intermediates (f32)
    return b


# ----------------------------------------------------------------------------
# Wrapper
# ----------------------------------------------------------------------------
def attn_block_pallas(x, params, num_groups=32, tq=None, tk=None, tl=None,
                      vmem_budget_bytes=ATTN_VMEM_BUDGET):
    """x: (B, C, D, H, W) float32. params: dict of PyTorch-style weights."""
    B, C = x.shape[:2]
    spatial = x.shape[2:]
    L = int(np.prod(spatial))
    G = num_groups
    assert C % G == 0
    cg = C // G

    # NCDHW -> (B, C, L): free reshape, layout stays channel-major (no transpose).
    x_cl = x.reshape(B, C, L).astype(jnp.float32)

    gamma = params["gamma"].astype(jnp.float32)
    beta = params["beta"].astype(jnp.float32)

    # fused q/k/v weights (bf16); 1/sqrt(C) attention scale folded into the q slice.
    attn_scale = float(C) ** -0.5
    Wqkv = jnp.concatenate(
        [params["Wq"].T * attn_scale, params["Wk"].T, params["Wv"].T], axis=1
    ).astype(jnp.bfloat16)                                             # (C, 3C)
    bqkv = jnp.concatenate(
        [params["bq"] * attn_scale, params["bk"], params["bv"]]
    ).reshape(1, 3 * C).astype(jnp.float32)
    Wp = params["Wp"].astype(jnp.bfloat16)                             # (C_out, C_in)
    bp = params["bp"].reshape(C, 1).astype(jnp.float32)

    def cparams(sem):
        return pltpu.CompilerParams(dimension_semantics=sem,
                                    vmem_limit_bytes=VMEM_LIMIT_BYTES)

    # --- Kernel A: per-channel moments, tiled over L (v7x-safe) -------------------
    tls = _pick_tile(L, 1024)
    ch_sum, ch_ssq = pl.pallas_call(
        gn_sums_kernel,
        out_shape=(jax.ShapeDtypeStruct((B, C, 1), jnp.float32),
                   jax.ShapeDtypeStruct((B, C, 1), jnp.float32)),
        grid=(B, L // tls),
        in_specs=[pl.BlockSpec((1, C, tls), lambda b, l: (b, 0, l))],
        out_specs=(pl.BlockSpec((1, C, 1), lambda b, l: (b, 0, 0)),
                   pl.BlockSpec((1, C, 1), lambda b, l: (b, 0, 0))),
        compiler_params=cparams(("parallel", "arbitrary")),
    )(x_cl)

    # --- tiny exact-f32 group finalize (O(B*C) scalars, off the hot loop) ----------
    n = float(cg * L)
    g_mean = ch_sum[..., 0].reshape(B, G, cg).sum(-1) / n              # (B, G)
    g_var = ch_ssq[..., 0].reshape(B, G, cg).sum(-1) / n - g_mean * g_mean
    g_rstd = lax.rsqrt(g_var + EPS)
    mean_c = jnp.repeat(g_mean, cg, axis=1)                            # (B, C)
    rstd_c = jnp.repeat(g_rstd, cg, axis=1)
    scale = (rstd_c * gamma[None, :])[..., None]                       # (B, C, 1)
    shift = (beta[None, :] - mean_c * rstd_c * gamma[None, :])[..., None]

    # --- Kernel B: GN affine + fused q/k/v projection (bf16 MXU) -------------------
    tl_ = tl if tl is not None else _pick_tile(L, 512)
    q, k, v = pl.pallas_call(
        gn_qkv_kernel,
        out_shape=tuple(jax.ShapeDtypeStruct((B, L, C), jnp.bfloat16) for _ in range(3)),
        grid=(B, L // tl_),
        in_specs=[
            pl.BlockSpec((1, C, tl_), lambda b, i: (b, 0, i)),   # x (channel-major)
            pl.BlockSpec((1, C, 1), lambda b, i: (b, 0, 0)),     # scale
            pl.BlockSpec((1, C, 1), lambda b, i: (b, 0, 0)),     # shift
            pl.BlockSpec((C, 3 * C), lambda b, i: (0, 0)),       # Wqkv (bf16)
            pl.BlockSpec((1, 3 * C), lambda b, i: (0, 0)),       # bqkv (f32)
        ],
        out_specs=tuple(pl.BlockSpec((1, tl_, C), lambda b, i: (b, i, 0))
                        for _ in range(3)),
        compiler_params=cparams(("parallel", "parallel")),
    )(x_cl, scale, shift, Wqkv, bqkv)

    # --- Kernel C: flash attention + proj_out + residual ---------------------------
    tq_ = tq if tq is not None else _pick_tile(L, 512)
    if tk is not None:
        tk_ = tk
    else:
        tk_ = None
        for cand in _tile_candidates(L):        # largest first -> K/V resident if it fits
            if _attn_vmem_bytes(tq_, cand, C) <= vmem_budget_bytes:
                tk_ = cand
                break
        if tk_ is None:
            tk_ = _tile_candidates(L)[-1]       # smallest candidate as best effort

    out_cl = pl.pallas_call(
        flash_attn_kernel,
        out_shape=jax.ShapeDtypeStruct((B, C, L), jnp.float32),
        grid=(B, L // tq_, L // tk_),
        in_specs=[
            pl.BlockSpec((1, C, tq_), lambda b, i, j: (b, 0, i)),  # x residual (CL)
            pl.BlockSpec((1, tq_, C), lambda b, i, j: (b, i, 0)),  # q (bf16, scaled)
            pl.BlockSpec((1, tk_, C), lambda b, i, j: (b, j, 0)),  # k (bf16)
            pl.BlockSpec((1, tk_, C), lambda b, i, j: (b, j, 0)),  # v (bf16)
            pl.BlockSpec((C, C), lambda b, i, j: (0, 0)),          # Wp (bf16)
            pl.BlockSpec((C, 1), lambda b, i, j: (0, 0)),          # bp (f32)
        ],
        out_specs=pl.BlockSpec((1, C, tq_), lambda b, i, j: (b, 0, i)),
        scratch_shapes=[
            pltpu.VMEM((tq_, 1), jnp.float32),   # running max m
            pltpu.VMEM((tq_, 1), jnp.float32),   # running sum l
            pltpu.VMEM((tq_, C), jnp.float32),   # accumulator
        ],
        compiler_params=cparams(("parallel", "parallel", "arbitrary")),
    )(x_cl, q, k, v, Wp, bp)

    # (B, C, L) -> NCDHW : free reshape, no transpose.
    return out_cl.reshape(B, C, *spatial)


# ----------------------------------------------------------------------------
# Pure-JAX f32 mirror of the PyTorch forward, for verification.
# ----------------------------------------------------------------------------
def attn_block_reference(x, params, num_groups=32):
    B, C = x.shape[:2]
    spatial = x.shape[2:]
    L = int(np.prod(spatial))
    hp = lax.Precision.HIGHEST
    gamma, beta = params["gamma"], params["beta"]

    xg = x.reshape(B, num_groups, -1)
    mu = xg.mean(-1, keepdims=True)
    var = xg.var(-1, keepdims=True)
    h = ((xg - mu) / jnp.sqrt(var + EPS)).reshape(x.shape)
    bshape = (1, C) + (1,) * len(spatial)
    h = h * gamma.reshape(bshape) + beta.reshape(bshape)

    hflat = h.reshape(B, C, L)
    lin = lambda W, b, t: jnp.einsum('oi,bil->bol', W, t, precision=hp) + b[None, :, None]
    q = lin(params["Wq"], params["bq"], hflat)
    k = lin(params["Wk"], params["bk"], hflat)
    v = lin(params["Wv"], params["bv"], hflat)

    w = jnp.einsum('bci,bcj->bij', q, k, precision=hp) * (float(C) ** -0.5)  # (B, L, L)
    w = jax.nn.softmax(w, axis=2)
    h2 = jnp.einsum('bcj,bij->bci', v, w, precision=hp)                      # (B, C, L)
    h2 = lin(params["Wp"], params["bp"], h2)
    return x + h2.reshape(x.shape)


if __name__ == "__main__":
    # Small shapes: batch=2, channels=128 (32 groups -> 4 ch/group, lane-dense C),
    # spatial (D, H, W) = (4, 8, 8) -> L = 256.
    B, C, D, H, W = 2, 128, 4, 8, 8
    key = jax.random.PRNGKey(0)
    ks = jax.random.split(key, 11)

    x = jax.random.normal(ks[0], (B, C, D, H, W), dtype=jnp.float32)

    wscale = 1.0 / math.sqrt(C)
    params = {
        "gamma": 1.0 + 0.1 * jax.random.normal(ks[1], (C,), dtype=jnp.float32),
        "beta": 0.1 * jax.random.normal(ks[2], (C,), dtype=jnp.float32),
        "Wq": wscale * jax.random.normal(ks[3], (C, C), dtype=jnp.float32),
        "bq": 0.05 * jax.random.normal(ks[4], (C,), dtype=jnp.float32),
        "Wk": wscale * jax.random.normal(ks[5], (C, C), dtype=jnp.float32),
        "bk": 0.05 * jax.random.normal(ks[6], (C,), dtype=jnp.float32),
        "Wv": wscale * jax.random.normal(ks[7], (C, C), dtype=jnp.float32),
        "bv": 0.05 * jax.random.normal(ks[8], (C,), dtype=jnp.float32),
        "Wp": wscale * jax.random.normal(ks[9], (C, C), dtype=jnp.float32),
        "bp": 0.05 * jax.random.normal(ks[10], (C,), dtype=jnp.float32),
    }

    ref = jax.block_until_ready(attn_block_reference(x, params))

    # 1) small tiles -> exercises the multi-tile online-softmax path (grid (2,2,2)).
    out_tiled = jax.block_until_ready(
        attn_block_pallas(x, params, tq=128, tk=128, tl=128))
    np.testing.assert_allclose(np.asarray(out_tiled), np.asarray(ref),
                               rtol=2e-2, atol=2e-2)

    # 2) default tiling -> K/V resident per batch (tk = L), single kv step.
    out_default = jax.block_until_ready(attn_block_pallas(x, params))
    np.testing.assert_allclose(np.asarray(out_default), np.asarray(ref),
                               rtol=2e-2, atol=2e-2)

    # Matmuls use bf16 MXU operands (f32 accumulation), so bf16-appropriate tolerance.
    print("KERNEL_OK")
</pallas_src>

<mosaic_0001>
module attributes {stable_mosaic.version = 11 : i64} {
  func.func @gn_sums_kernel(%arg0: i32, %arg1: i32, %arg2: memref<1x128x256xf32, #tpu.memory_space<vmem>>, %arg3: memref<1x128x1xf32, #tpu.memory_space<vmem>>, %arg4: memref<1x128x1xf32, #tpu.memory_space<vmem>>) attributes {dimension_semantics = [#tpu.dimension_semantics<parallel>, #tpu.dimension_semantics<arbitrary>], iteration_bounds = array<i64: 2, 1>, scalar_prefetch = 0 : i64, scratch_operands = 0 : i64, tpu.core_type = #tpu.core_type<tc>, window_params = [{transform_indices = @transform_0, window_bounds = array<i64: 1, 128, 256>}, {transform_indices = @transform_1, window_bounds = array<i64: 1, 128, 1>}, {transform_indices = @transform_2, window_bounds = array<i64: 1, 128, 1>}]} {
    %c0_i32 = arith.constant 0 : i32
    %0 = arith.cmpi eq, %arg1, %c0_i32 : i32
    %1 = arith.extui %0 : i1 to i32
    %c0_i32_0 = arith.constant 0 : i32
    %2 = arith.cmpi ne, %1, %c0_i32_0 : i32
    scf.if %2 {
      %cst_16 = arith.constant 0.000000e+00 : f32
      %22 = vector.broadcast %cst_16 : f32 to vector<1x128x1xf32>
      %c0_17 = arith.constant 0 : index
      %c0_18 = arith.constant 0 : index
      %c0_19 = arith.constant 0 : index
      %23 = vector.load %arg3[%c0_17, %c0_18, %c0_19] : memref<1x128x1xf32, #tpu.memory_space<vmem>>, vector<1x128x1xf32>
      tpu.vector_store %arg3[%c0_17, %c0_18, %c0_19], %22 {strides = array<i32>} : memref<1x128x1xf32, #tpu.memory_space<vmem>>, vector<1x128x1xf32>,
      %cst_20 = arith.constant 0.000000e+00 : f32
      %24 = vector.broadcast %cst_20 : f32 to vector<1x128x1xf32>
      %c0_21 = arith.constant 0 : index
      %c0_22 = arith.constant 0 : index
      %c0_23 = arith.constant 0 : index
      %25 = vector.load %arg4[%c0_21, %c0_22, %c0_23] : memref<1x128x1xf32, #tpu.memory_space<vmem>>, vector<1x128x1xf32>
      tpu.vector_store %arg4[%c0_21, %c0_22, %c0_23], %24 {strides = array<i32>} : memref<1x128x1xf32, #tpu.memory_space<vmem>>, vector<1x128x1xf32>,
    } else {
    }
    %c0 = arith.constant 0 : index
    %c0_1 = arith.constant 0 : index
    %c0_2 = arith.constant 0 : index
    %3 = vector.load %arg2[%c0, %c0_1, %c0_2] : memref<1x128x256xf32, #tpu.memory_space<vmem>>, vector<1x128x256xf32>
    %4 = vector.shape_cast %3 : vector<1x128x256xf32> to vector<128x256xf32>
    %c0_3 = arith.constant 0 : index
    %c0_4 = arith.constant 0 : index
    %c0_5 = arith.constant 0 : index
    %5 = vector.load %arg3[%c0_3, %c0_4, %c0_5] : memref<1x128x1xf32, #tpu.memory_space<vmem>>, vector<1x128x1xf32>
    %6 = vector.shape_cast %5 : vector<1x128x1xf32> to vector<128x1xf32>
    %cst = arith.constant dense<0.000000e+00> : vector<128xf32>
    %7 = vector.multi_reduction <add>, %4, %cst [1] : vector<128x256xf32> to vector<128xf32>
    %8 = vector.shape_cast %7 : vector<128xf32> to vector<128x1xf32>
    %9 = arith.addf %6, %8 : vector<128x1xf32>
    %c0_6 = arith.constant 0 : index
    %c0_7 = arith.constant 0 : index
    %c0_8 = arith.constant 0 : index
    %10 = vector.load %arg3[%c0_6, %c0_7, %c0_8] : memref<1x128x1xf32, #tpu.memory_space<vmem>>, vector<1x128x1xf32>
    %11 = vector.shape_cast %10 : vector<1x128x1xf32> to vector<128x1xf32>
    %12 = vector.shape_cast %9 : vector<128x1xf32> to vector<1x128x1xf32>
    tpu.vector_store %arg3[%c0_6, %c0_7, %c0_8], %12 {strides = array<i32>} : memref<1x128x1xf32, #tpu.memory_space<vmem>>, vector<1x128x1xf32>,
    %c0_9 = arith.constant 0 : index
    %c0_10 = arith.constant 0 : index
    %c0_11 = arith.constant 0 : index
    %13 = vector.load %arg4[%c0_9, %c0_10, %c0_11] : memref<1x128x1xf32, #tpu.memory_space<vmem>>, vector<1x128x1xf32>
    %14 = vector.shape_cast %13 : vector<1x128x1xf32> to vector<128x1xf32>
    %15 = arith.mulf %4, %4 : vector<128x256xf32>
    %cst_12 = arith.constant dense<0.000000e+00> : vector<128xf32>
    %16 = vector.multi_reduction <add>, %15, %cst_12 [1] : vector<128x256xf32> to vector<128xf32>
    %17 = vector.shape_cast %16 : vector<128xf32> to vector<128x1xf32>
    %18 = arith.addf %14, %17 : vector<128x1xf32>
    %c0_13 = arith.constant 0 : index
    %c0_14 = arith.constant 0 : index
    %c0_15 = arith.constant 0 : index
    %19 = vector.load %arg4[%c0_13, %c0_14, %c0_15] : memref<1x128x1xf32, #tpu.memory_space<vmem>>, vector<1x128x1xf32>
    %20 = vector.shape_cast %19 : vector<1x128x1xf32> to vector<128x1xf32>
    %21 = vector.shape_cast %18 : vector<128x1xf32> to vector<1x128x1xf32>
    tpu.vector_store %arg4[%c0_13, %c0_14, %c0_15], %21 {strides = array<i32>} : memref<1x128x1xf32, #tpu.memory_space<vmem>>, vector<1x128x1xf32>,
    return
  }
  func.func @transform_0(%arg0: i32, %arg1: i32) -> (i32, i32, i32) {
    %c0_i32 = arith.constant 0 : i32
    %c0_i32_0 = arith.constant 0 : i32
    return %arg0, %c0_i32, %arg1 : i32, i32, i32
  }
  func.func @transform_1(%arg0: i32, %arg1: i32) -> (i32, i32, i32) {
    %c0_i32 = arith.constant 0 : i32
    %c0_i32_0 = arith.constant 0 : i32
    %c0_i32_1 = arith.constant 0 : i32
    return %arg0, %c0_i32, %c0_i32_0 : i32, i32, i32
  }
  func.func @transform_2(%arg0: i32, %arg1: i32) -> (i32, i32, i32) {
    %c0_i32 = arith.constant 0 : i32
    %c0_i32_0 = arith.constant 0 : i32
    %c0_i32_1 = arith.constant 0 : i32
    return %arg0, %c0_i32, %c0_i32_0 : i32, i32, i32
  }
}

</mosaic_0001>

<bundles_post_ra>
// kernel: tpu_custom_call.1
= control target key start
LH: loop header
LB: loop body
LE: loop exit
PB: predicated region body
PF: predicated region fallthrough
CT: control target
= control target key end

     0   :  { %8 = vsyncpa [#allocation3], 0  ;;  %s1471_s0 = inlined_call_operand.hbm [shape: f32[2,128,256], index: 0, kind: input, shape index: {}]   ;;  %s1472_s1 = inlined_call_operand.hbm [shape: f32[2,128,1], index: 1, kind: output, shape index: {0}]   ;;  %s1473_s2 = inlined_call_operand.hbm [shape: f32[2,128,1], index: 2, kind: output, shape index: {1}]  }
   0x1   :  { %10 = vsyncpa [#allocation3 + $0x1], 0 }
   0x2   :  { %11 = vsyncpa [#allocation4], 0 }
   0x3   :  { %13 = vsyncpa [#allocation4 + $0x1], 0 }
   0x4   :  { %14 = vsyncpa [#allocation7], 0 }
   0x5   :  { %16 = vsyncpa [#allocation7 + $0x1], 0  ;;  %s898_s9 = smov 0   ;;  %s900_s10 = smov 0  }
   0x6   :  { %s902_s11 = smov 0   ;;  %s904_s12 = smov 0  }
   0x7   :  { %s906_s13 = smov 0   ;;  %s908_s14 = smov 0  }
   0x8 LB: > { %s635_s15 = sadd.s32 4294967295, %s873_s14   ;;  %s636_s16 = sadd.s32 4294967294, %s873_s14   ;;  %s873_s14 = sphi %s908_s14, %s22_s14   ;;  %s869_s13 = sphi %s906_s13, %s1488_s13   ;;  %s865_s12 = sphi %s904_s12, %s1487_s12   ;;  %s861_s11 = sphi %s902_s11, %s1486_s11   ;;  %s857_s10 = sphi %s900_s10, %s1485_s10   ;;  %s853_s9 = sphi %s898_s9, %s1484_s9  }
   0x9   : > { %s34_s17 = sadd.s32 1, %s869_s13  ;;  %s43_s18 = sadd.s32 1, %s861_s11 }
   0xa   : > { %p36_p0 = scmp.ge.s32.totalorder %s34_s17, 2  ;;  %p50_p1 = scmp.ne.s32.totalorder %s861_s11, %s857_s10 }
   0xb   : > { %p51_p2 = scmp.eq.s32.totalorder %s873_s14, 0  ;;  %p56_p3 = scmp.ne.s32.totalorder %s857_s10, %s853_s9 }
   0xc   : > { %s1490_s17 = smov (%p36_p0, %s34_s17), 0  ;;  %p57_p5 = scmp.eq.s32.totalorder %s635_s15, 0 }
   0xd   : > { %p939_p4 = por %p51_p2, %p50_p1  ;;  %s38_s20 = ssub.s32 %s869_s13, %s1490_s17 }
   0xe   : > { %p80_p6 = scmp.eq.s32.totalorder %s635_s15, 1  ;;  %p41_p7 = scmp.eq.s32.totalorder %s38_s20, 0 }
   0xf   : > { %p945_p8 = por %p57_p5, %p56_p3  ;;  %p86_p10 = scmp.eq.s32.totalorder %s636_s16, 1 }
  0x10   : > { %p949_p9 = por %p80_p6, %p50_p1  ;;  %p674_p13 = scmp.lt.s32.totalorder %s873_s14, 2 }
  0x11   : > { %s954_s23 = scalar_select %p41_p7, %s861_s11, %s43_s18  }
  0x12   : > { %s1477_s22 = scalar_select %p949_p9, 1, 0 }
  0x13   : > { %p956_p11 = por %p86_p10, %p56_p3  ;;  %s132_s25 = sand.u32 1, %s861_s11  }
  0x14   : > { %s639_s26 = sshll.u32 %s132_s25, 8  ;;  %s654_s27 = sshll.u32 %s869_s13, 12 }
  0x15   : > { %s1478_s24 = scalar_select %p956_p11, 1, 0 }
  0x16   : > { %s967_s30 = scalar_lea.hbm %s1471_s0, %s654_s27  ;;  %s136_s3 = scalar_lea.vmem [#allocation2], %s639_s26 }
  0x17   : > { %s145_s4 = sshll.u32 %s136_s3, 4  ;;  %p973_p0 = pnand %p674_p13, %p939_p4  ;;  %s969_s4 = int_to_ptr.vmem [resolvable:$true] %s145_s4 }
  0x18   : > { %s978_s6 = scalar_lea.sflag [#allocation3], %s132_s25  ;;  %s729_s7 = scalar_lea.hbm %s967_s30, 4096 }
  0x19   : > { %p730_p2 = scmp.ne.s32.totalorder %s967_s30, %s729_s7  ;;  %p731_p3 = pneg %p973_p0 }
  0x1a   : > { %s734_s16 = scalar_lea.hbm %s1471_s0, 8192  ;;  %p735_p4 = scmp.lt.u32.totalorder %s967_s30, %s1471_s0 }
  0x1b   : > { %p732_p5 = pnand %p731_p3, %p730_p2  ;;  %p736_p7 = scmp.lt.u32.totalorder %s734_s16, %s729_s7 }
  0x1c   : > { %p738_p13 = scmp.lt.u32.totalorder %s729_s7, %s967_s30 }
  0x1d   : > { %p733_p6 = pneg %p732_p5  ;;  %p737_p10 = por %p736_p7, %p735_p4 }
  0x1f   : > { %p739_p12 = por %p738_p13, %p737_p10 }
  0x21   : > { %p740_p1 = pnand %p739_p12, %p733_p6 }
  0x23   : > { %743 = shalt.err (!%p740_p1)
}
  0x24   : > { %s744_s20 = scalar_lea.vmem %s969_s4, 4096  ;;  %s875_s25 = smov [#allocation2]  }
  0x25   : > { %p745_p2 = scmp.ne.s32.totalorder %s969_s4, %s744_s20  ;;  %s749_s26 = sshll.u32 %s875_s25, 4  ;;  %s750_s26 = int_to_ptr.vmem [resolvable:$false] %s749_s26 }
  0x26   : > { %s751_s27 = scalar_lea.vmem %s750_s26, 8192  ;;  %p752_p9 = scmp.lt.s32.totalorder %s969_s4, %s750_s26 }
  0x27   : > { %p747_p5 = pnand %p745_p2, %p731_p3  ;;  %p753_p4 = scmp.lt.s32.totalorder %s751_s27, %s744_s20 }
  0x29   : > { %p748_p11 = pneg %p747_p5  ;;  %p754_p7 = por %p753_p4, %p752_p9 }
  0x2b   : > { %p755_p10 = pnand %p754_p7, %p748_p11 }
  0x2d   : > { %758 = shalt.err (!%p755_p10)
}
  0x2e   : > { %s876_s28 = smov 256   ;;  %s877_s29 = smov 16  }
  0x2f   : > { %666 = dma.hbm_to_vmem [thread:$0]  (!%p973_p0), %s967_s30, 4096, %s969_s4, %s978_s6, %s876_s28, %s876_s28, %s877_s29  }
  0x30   : > { %p153_p12 = scmp.lt.s32.totalorder %s873_s14, 3  ;;  %p1480_p1 = scmp.ge.s32.totalorder %s873_s14, 1 }
  0x32   : > { %p154_p3 = pnand %p1480_p1, %p153_p12 }
  0x33   : > { %s1010_s3 = sand.u32 (!%p154_p3), 1, %s857_s10  }
  0x34   : > { %157 = sbr.rel (%p154_p3) target bundleno = 291 (0x123), region = 24  ;;  %s643_s7 = sshll.u32 (!%p154_p3), %s1010_s3, 8 }
  0x35   : > { %s160_s8 = scalar_lea.sflag (!%p154_p3), [#allocation3], %s1010_s3  ;;  %s1014_s15 = scalar_lea.vmem (!%p154_p3), [#allocation2], %s643_s7 }
  0x3b   : > { %840 = dma.done.wait (%p945_p8), %s160_s8, 4096  }
  0x3c   : > { %842 = vsyncadd (%p945_p8), %s160_s8, 4294963200  ;;  %s644_s30 = sshll.u32 %s1010_s3, 7  ;;  %vm194_vm0 = vcmask 7168   ;;  %v878_v0 = vmov 0.0   ;;  %v1074_v1 = vld [vmem:[%s1014_s15 + $0x20] sm:$0xff]  ;;  %v1077_v2 = vld [vmem:[%s1014_s15 + $0x28] sm:$0xff] }
  0x3d   : > { %s1023_s4 = scalar_lea.vmem [#allocation5], %s644_s30  ;;  %v227_v3 = vld [vmem:[%s1014_s15] sm:$0xff]  ;;  %v281_v4 = vadd.f32 %v1077_v2, %v1074_v1  ;;  %v228_v5 = vld [vmem:[%s1014_s15 + $0x8] sm:$0xff]  ;;  %v1084_v6 = vld [vmem:[%s1014_s15 + $0x30] sm:$0xff]  ;;  %v376_v56 = vmul.f32 %v1074_v1, %v1074_v1  ;;  %v377_v57 = vmul.f32 %v1077_v2, %v1077_v2  ;;  %s1195_s21 = scalar_lea.vmem [#allocation6], %s644_s30 }
  0x3e   : > { %197 = vst.msk [vmem:[%s1023_s4 + $0x10] sm:$0xff] %vm194_vm0, %v878_v0  ;;  %195 = vst.msk [vmem:[%s1023_s4] sm:$0xff] %vm194_vm0, %v878_v0  ;;  %v1087_v7 = vld [vmem:[%s1014_s15 + $0x38] sm:$0xff]  ;;  %v275_v8 = vadd.f32 %v228_v5, %v227_v3  ;;  %v229_v9 = vld [vmem:[%s1014_s15 + $0x10] sm:$0xff]  ;;  %v372_v50 = vmul.f32 %v227_v3, %v227_v3  ;;  %v373_v51 = vmul.f32 %v228_v5, %v228_v5  ;;  %s655_s5 = sshll.u32 %s865_s12, 11  ;;  %s503_s6 = sshll.u32 %s1023_s4, 4  ;;  %s1330_s6 = int_to_ptr.vmem [resolvable:$true] %s503_s6 }
  0x3f   : > { %196 = vst.msk [vmem:[%s1023_s4 + $0x8] sm:$0xff] %vm194_vm0, %v878_v0  ;;  %198 = vst.msk [vmem:[%s1023_s4 + $0x18] sm:$0xff] %vm194_vm0, %v878_v0  ;;  %v230_v10 = vld [vmem:[%s1014_s15 + $0x18] sm:$0xff]  ;;  %282 = vadd.xlane.f32.xlu1 %v281_v4  ;;  %v284_v11 = vadd.f32 %v1087_v7, %v1084_v6  ;;  %v237_v13 = vld [vmem:[%s1014_s15 + $0x50] sm:$0xff]  ;;  %v374_v48 = vmul.f32 %v229_v9, %v229_v9  ;;  %v378_v54 = vmul.f32 %v1084_v6, %v1084_v6  ;;  %s1328_s19 = scalar_lea.hbm %s1472_s1, %s655_s5  ;;  %s485_s20 = scalar_lea.sflag [#allocation4], %s1010_s3 }
  0x40   : > { %199 = vst.msk [vmem:[%s1023_s4 + $0x20] sm:$0xff] %vm194_vm0, %v878_v0  ;;  %200 = vst.msk [vmem:[%s1023_s4 + $0x28] sm:$0xff] %vm194_vm0, %v878_v0  ;;  %276 = vadd.xlane.f32.xlu0 %v275_v8  ;;  %v278_v12 = vadd.f32 %v230_v10, %v229_v9  ;;  %v238_v14 = vld [vmem:[%s1014_s15 + $0x58] sm:$0xff]  ;;  %v1096_v15 = vld [vmem:[%s1014_s15 + $0x40] sm:$0xff]  ;;  %v375_v49 = vmul.f32 %v230_v10, %v230_v10  ;;  %v379_v55 = vmul.f32 %v1087_v7, %v1087_v7  ;;  %s759_s25 = scalar_lea.vmem %s1330_s6, 2048  ;;  %p1481_p9 = scmp.ne.s32.totalorder %s1477_s22, 0 }
  0x41   : > { %201 = vst.msk [vmem:[%s1023_s4 + $0x30] sm:$0xff] %vm194_vm0, %v878_v0  ;;  %202 = vst.msk [vmem:[%s1023_s4 + $0x38] sm:$0xff] %vm194_vm0, %v878_v0  ;;  %v1099_v16 = vld [vmem:[%s1014_s15 + $0x48] sm:$0xff]  ;;  %v290_v17 = vadd.f32 %v238_v14, %v237_v13  ;;  %v241_v19 = vld [vmem:[%s1014_s15 + $0x70] sm:$0xff]  ;;  %v404_v58 = vadd.f32 %v373_v51, %v372_v50  ;;  %v382_v60 = vmul.f32 %v237_v13, %v237_v13  ;;  %p760_p8 = scmp.ne.s32.totalorder %s1330_s6, %s759_s25  ;;  %s879_s26 = smov [#allocation5]  }
  0x42   : > { %203 = vst.msk [vmem:[%s1023_s4 + $0x40] sm:$0xff] %vm194_vm0, %v878_v0  ;;  %204 = vst.msk [vmem:[%s1023_s4 + $0x48] sm:$0xff] %vm194_vm0, %v878_v0  ;;  %v287_v18 = vadd.f32 %v1099_v16, %v1096_v15  ;;  %v242_v20 = vld [vmem:[%s1014_s15 + $0x78] sm:$0xff]  ;;  %v1106_v21 = vld [vmem:[%s1014_s15 + $0x60] sm:$0xff]  ;;  %v407_v53 = vadd.f32 %v375_v49, %v374_v48  ;;  %v413_v59 = vadd.f32 %v379_v55, %v378_v54  ;;  %s763_s27 = sshll.u32 %s879_s26, 4  ;;  %s764_s27 = int_to_ptr.vmem [resolvable:$false] %s763_s27 }
  0x43   : > { %205 = vst.msk [vmem:[%s1023_s4 + $0x50] sm:$0xff] %vm194_vm0, %v878_v0  ;;  %206 = vst.msk [vmem:[%s1023_s4 + $0x58] sm:$0xff] %vm194_vm0, %v878_v0  ;;  %285 = vadd.xlane.f32.xlu1 %v284_v11  ;;  %v1109_v22 = vld [vmem:[%s1014_s15 + $0x68] sm:$0xff]  ;;  %v296_v23 = vadd.f32 %v242_v20, %v241_v19  ;;  %v1114_v25 = vld [vmem:[%s1014_s15 + $0x90] sm:$0xff]  ;;  %v383_v61 = vmul.f32 %v238_v14, %v238_v14  ;;  %v410_v62 = vadd.f32 %v377_v57, %v376_v56  ;;  %p761_p11 = pnand %p760_p8, %p1481_p9  ;;  %s765_s28 = scalar_lea.vmem %s764_s27, 4096 }
  0x44   : > { %207 = vst.msk [vmem:[%s1023_s4 + $0x60] sm:$0xff] %vm194_vm0, %v878_v0  ;;  %208 = vst.msk [vmem:[%s1023_s4 + $0x68] sm:$0xff] %vm194_vm0, %v878_v0  ;;  %279 = vadd.xlane.f32.xlu0 %v278_v12  ;;  %v293_v24 = vadd.f32 %v1109_v22, %v1106_v21  ;;  %v1117_v26 = vld [vmem:[%s1014_s15 + $0x98] sm:$0xff]  ;;  %v1120_v27 = vld [vmem:[%s1014_s15 + $0x80] sm:$0xff]  ;;  %v380_v63 = vmul.f32 %v1096_v15, %v1096_v15  ;;  %v381_v3 = vmul.f32 %v1099_v16, %v1099_v16  ;;  %p766_p6 = scmp.lt.s32.totalorder %s1330_s6, %s764_s27  ;;  %p767_p13 = scmp.lt.s32.totalorder %s765_s28, %s759_s25 }
  0x45   : > { %209 = vst.msk [vmem:[%s1023_s4 + $0x70] sm:$0xff] %vm194_vm0, %v878_v0  ;;  %210 = vst.msk [vmem:[%s1023_s4 + $0x78] sm:$0xff] %vm194_vm0, %v878_v0  ;;  %v1123_v28 = vld [vmem:[%s1014_s15 + $0x88] sm:$0xff]  ;;  %v302_v29 = vadd.f32 %v1117_v26, %v1114_v25  ;;  %v1130_v31 = vld [vmem:[%s1014_s15 + $0xb0] sm:$0xff]  ;;  %v419_v1 = vadd.f32 %v383_v61, %v382_v60  ;;  %v386_v4 = vmul.f32 %v241_v19, %v241_v19  ;;  %p762_p0 = pneg %p761_p11 }
  0x46   : > { %v299_v30 = vadd.f32 %v1123_v28, %v1120_v27  ;;  %v1133_v32 = vld [vmem:[%s1014_s15 + $0xb8] sm:$0xff]  ;;  %v1136_v33 = vld [vmem:[%s1014_s15 + $0xa0] sm:$0xff]  ;;  %v1139_v34 = vld [vmem:[%s1014_s15 + $0xa8] sm:$0xff]  ;;  %v387_v5 = vmul.f32 %v242_v20, %v242_v20  ;;  %v416_v2 = vadd.f32 %v381_v3, %v380_v63  ;;  %v384_v6 = vmul.f32 %v1106_v21, %v1106_v21  ;;  %212 = vst.msk [vmem:[%s1195_s21 + $0x8] sm:$0xff] %vm194_vm0, %v878_v0  ;;  %p768_p2 = por %p767_p13, %p766_p6 }
  0x47   : > { %291 = vadd.xlane.f32.xlu1 %v290_v17  ;;  %v308_v35 = vadd.f32 %v1133_v32, %v1130_v31  ;;  %v305_v36 = vadd.f32 %v1139_v34, %v1136_v33  ;;  %v1146_v37 = vld [vmem:[%s1014_s15 + $0xd0] sm:$0xff]  ;;  %v1149_v38 = vld [vmem:[%s1014_s15 + $0xd8] sm:$0xff]  ;;  %v1152_v39 = vld [vmem:[%s1014_s15 + $0xc0] sm:$0xff]  ;;  %v385_v7 = vmul.f32 %v1109_v22, %v1109_v22  ;;  %211 = vst.msk [vmem:[%s1195_s21] sm:$0xff] %vm194_vm0, %v878_v0 }
  0x48   : > { %288 = vadd.xlane.f32.xlu0 %v287_v18  ;;  %v1155_v40 = vld [vmem:[%s1014_s15 + $0xc8] sm:$0xff]  ;;  %v314_v41 = vadd.f32 %v1149_v38, %v1146_v37  ;;  %v1162_v43 = vld [vmem:[%s1014_s15 + $0xf0] sm:$0xff]  ;;  %v1165_v44 = vld [vmem:[%s1014_s15 + $0xf8] sm:$0xff]  ;;  %213 = vst.msk [vmem:[%s1195_s21 + $0x10] sm:$0xff] %vm194_vm0, %v878_v0  ;;  %v425_v8 = vadd.f32 %v387_v5, %v386_v4  ;;  %v390_v9 = vmul.f32 %v1114_v25, %v1114_v25  ;;  %p769_p5 = pnand %p768_p2, %p762_p0 }
  0x49   : > { %v311_v42 = vadd.f32 %v1155_v40, %v1152_v39  ;;  %v1168_v45 = vld [vmem:[%s1014_s15 + $0xe0] sm:$0xff]  ;;  %v1171_v46 = vld [vmem:[%s1014_s15 + $0xe8] sm:$0xff]  ;;  %v320_v47 = vadd.f32 %v1165_v44, %v1162_v43  ;;  %214 = vst.msk [vmem:[%s1195_s21 + $0x18] sm:$0xff] %vm194_vm0, %v878_v0  ;;  %215 = vst.msk [vmem:[%s1195_s21 + $0x20] sm:$0xff] %vm194_vm0, %v878_v0  ;;  %v391_v10 = vmul.f32 %v1117_v26, %v1117_v26 }
  0x4a   : > { %v317_v52 = vadd.f32 %v1171_v46, %v1168_v45  ;;  %216 = vst.msk [vmem:[%s1195_s21 + $0x28] sm:$0xff] %vm194_vm0, %v878_v0  ;;  %217 = vst.msk [vmem:[%s1195_s21 + $0x30] sm:$0xff] %vm194_vm0, %v878_v0  ;;  %v422_v11 = vadd.f32 %v385_v7, %v384_v6  ;;  %v388_v12 = vmul.f32 %v1120_v27, %v1120_v27  ;;  %v266_v51 = vld [vmem:[%s1023_s4 + $0x38] sm:$0xff]  ;;  %v268_v57 = vld [vmem:[%s1023_s4 + $0x48] sm:$0xff] }
  0x4b   : > { %297 = vadd.xlane.f32.xlu1 %v296_v23  ;;  %218 = vst.msk [vmem:[%s1195_s21 + $0x38] sm:$0xff] %vm194_vm0, %v878_v0  ;;  %219 = vst.msk [vmem:[%s1195_s21 + $0x40] sm:$0xff] %vm194_vm0, %v878_v0  ;;  %v389_v13 = vmul.f32 %v1123_v28, %v1123_v28  ;;  %v431_v14 = vadd.f32 %v391_v10, %v390_v9  ;;  %v395_v15 = vmul.f32 %v1133_v32, %v1133_v32  ;;  %v270_v63 = vld [vmem:[%s1023_s4 + $0x58] sm:$0xff]  ;;  %v269_v3 = vld [vmem:[%s1023_s4 + $0x50] sm:$0xff] }
  0x4c   : > { %294 = vadd.xlane.f32.xlu0 %v293_v24  ;;  %220 = vst.msk [vmem:[%s1195_s21 + $0x48] sm:$0xff] %vm194_vm0, %v878_v0  ;;  %221 = vst.msk [vmem:[%s1195_s21 + $0x50] sm:$0xff] %vm194_vm0, %v878_v0  ;;  %v392_v17 = vmul.f32 %v1136_v33, %v1136_v33  ;;  %v393_v18 = vmul.f32 %v1139_v34, %v1139_v34  ;;  %v398_v20 = vmul.f32 %v1146_v37, %v1146_v37  ;;  %v261_v33 = vld [vmem:[%s1023_s4 + $0x10] sm:$0xff]  ;;  %v259_v34 = vld [vmem:[%s1023_s4] sm:$0xff] }
  0x4d   : > { %222 = vst.msk [vmem:[%s1195_s21 + $0x58] sm:$0xff] %vm194_vm0, %v878_v0  ;;  %223 = vst.msk [vmem:[%s1195_s21 + $0x60] sm:$0xff] %vm194_vm0, %v878_v0  ;;  %v428_v16 = vadd.f32 %v389_v13, %v388_v12  ;;  %v399_v21 = vmul.f32 %v1149_v38, %v1149_v38  ;;  %v396_v23 = vmul.f32 %v1152_v39, %v1152_v39  ;;  %v262_v39 = vld [vmem:[%s1023_s4 + $0x18] sm:$0xff]  ;;  %v272_v6 = vld [vmem:[%s1023_s4 + $0x68] sm:$0xff] }
  0x4e   : > { %224 = vst.msk [vmem:[%s1195_s21 + $0x68] sm:$0xff] %vm194_vm0, %v878_v0  ;;  %225 = vst.msk [vmem:[%s1195_s21 + $0x70] sm:$0xff] %vm194_vm0, %v878_v0  ;;  %v434_v22 = vadd.f32 %v393_v18, %v392_v17  ;;  %v397_v24 = vmul.f32 %v1155_v40, %v1155_v40  ;;  %v402_v26 = vmul.f32 %v1162_v43, %v1162_v43  ;;  %v260_v40 = vld [vmem:[%s1023_s4 + $0x8] sm:$0xff]  ;;  %v271_v7 = vld [vmem:[%s1023_s4 + $0x60] sm:$0xff] }
  0x4f   : > { %303 = vadd.xlane.f32.xlu1 %v302_v29  ;;  %226 = vst.msk [vmem:[%s1195_s21 + $0x78] sm:$0xff] %vm194_vm0, %v878_v0  ;;  %v394_v0 = vmul.f32 %v1130_v31, %v1130_v31  ;;  %v443_v25 = vadd.f32 %v399_v21, %v398_v20  ;;  %v403_v27 = vmul.f32 %v1165_v44, %v1165_v44  ;;  %v274_v12 = vld [vmem:[%s1023_s4 + $0x78] sm:$0xff]  ;;  %v273_v13 = vld [vmem:[%s1023_s4 + $0x70] sm:$0xff]  ;;  %v357_v17 = vld [vmem:[%s1195_s21 + $0x8] sm:$0xff] }
  0x50   : > { %300 = vadd.xlane.f32.xlu0 %v299_v30  ;;  %v440_v28 = vadd.f32 %v397_v24, %v396_v23  ;;  %v400_v29 = vmul.f32 %v1168_v45, %v1168_v45  ;;  %v401_v30 = vmul.f32 %v1171_v46, %v1171_v46  ;;  %v264_v45 = vld [vmem:[%s1023_s4 + $0x28] sm:$0xff]  ;;  %v263_v46 = vld [vmem:[%s1023_s4 + $0x20] sm:$0xff] }
  0x51   : > { %v437_v19 = vadd.f32 %v395_v15, %v394_v0  ;;  %v449_v31 = vadd.f32 %v403_v27, %v402_v26  ;;  %v356_v18 = vld [vmem:[%s1195_s21] sm:$0xff] }
  0x52   : > { %v446_v32 = vadd.f32 %v401_v30, %v400_v29 }
  0x53   : > { %309 = vadd.xlane.f32.xlu1 %v308_v35 }
  0x54   : > { %306 = vadd.xlane.f32.xlu0 %v305_v36 }
  0x57   : > { %315 = vadd.xlane.f32.xlu1 %v314_v41 }
  0x58   : > { %312 = vadd.xlane.f32.xlu0 %v311_v42 }
  0x5b   : > { %321 = vadd.xlane.f32.xlu1 %v320_v47 }
  0x5c   : > { %318 = vadd.xlane.f32.xlu0 %v317_v52  ;;  %v265_v52 = vld [vmem:[%s1023_s4 + $0x30] sm:$0xff] }
  0x5f   : > { %408 = vadd.xlane.f32.xlu1 %v407_v53 }
  0x60   : > { %405 = vadd.xlane.f32.xlu0 %v404_v58  ;;  %v267_v58 = vld [vmem:[%s1023_s4 + $0x40] sm:$0xff] }
  0x63   : > { %414 = vadd.xlane.f32.xlu1 %v413_v59 }
  0x64   : > { %411 = vadd.xlane.f32.xlu0 %v410_v62 }
  0x67   : > { %420 = vadd.xlane.f32.xlu1 %v419_v1 }
  0x68   : > { %417 = vadd.xlane.f32.xlu0 %v416_v2 }
  0x6b   : > { %426 = vadd.xlane.f32.xlu1 %v425_v8 }
  0x6c   : > { %423 = vadd.xlane.f32.xlu0 %v422_v11 }
  0x6f   : > { %432 = vadd.xlane.f32.xlu1 %v431_v14 }
  0x70   : > { %429 = vadd.xlane.f32.xlu0 %v428_v16 }
  0x73   : > { %438 = vadd.xlane.f32.xlu1 %v437_v19 }
  0x74   : > { %435 = vadd.xlane.f32.xlu0 %v434_v22 }
  0x77   : > { %444 = vadd.xlane.f32.xlu1 %v443_v25 }
  0x78   : > { %441 = vadd.xlane.f32.xlu0 %v440_v28 }
  0x7b   : > { %450 = vadd.xlane.f32.xlu1 %v449_v31 }
  0x7c   : > { %447 = vadd.xlane.f32.xlu0 %v446_v32 }
  0xcc   : > { %v283_v35 = vpop.xlane.xlu1 %282 }
  0xcd   : > { %v325_v36 = vadd.f32 %v283_v35, %v261_v33  ;;  %v277_v37 = vpop.xlane.xlu0 %276 }
  0xce   : > { %v323_v38 = vadd.f32 %v277_v37, %v259_v34 }
  0xcf   : > { %342 = vst.msk [vmem:[%s1023_s4 + $0x10] sm:$0xff] %vm194_vm0, %v325_v36 }
  0xd0   : > { %340 = vst.msk [vmem:[%s1023_s4] sm:$0xff] %vm194_vm0, %v323_v38  ;;  %v286_v41 = vpop.xlane.xlu1 %285 }
  0xd1   : > { %v326_v42 = vadd.f32 %v286_v41, %v262_v39  ;;  %v280_v43 = vpop.xlane.xlu0 %279 }
  0xd2   : > { %v324_v44 = vadd.f32 %v280_v43, %v260_v40 }
  0xd3   : > { %343 = vst.msk [vmem:[%s1023_s4 + $0x18] sm:$0xff] %vm194_vm0, %v326_v42 }
  0xd4   : > { %341 = vst.msk [vmem:[%s1023_s4 + $0x8] sm:$0xff] %vm194_vm0, %v324_v44  ;;  %v292_v47 = vpop.xlane.xlu1 %291 }
  0xd5   : > { %v328_v48 = vadd.f32 %v292_v47, %v264_v45  ;;  %v289_v49 = vpop.xlane.xlu0 %288 }
  0xd6   : > { %v327_v50 = vadd.f32 %v289_v49, %v263_v46 }
  0xd7   : > { %345 = vst.msk [vmem:[%s1023_s4 + $0x28] sm:$0xff] %vm194_vm0, %v328_v48 }
  0xd8   : > { %344 = vst.msk [vmem:[%s1023_s4 + $0x20] sm:$0xff] %vm194_vm0, %v327_v50  ;;  %v298_v53 = vpop.xlane.xlu1 %297 }
  0xd9   : > { %v330_v54 = vadd.f32 %v298_v53, %v266_v51  ;;  %v295_v55 = vpop.xlane.xlu0 %294 }
  0xda   : > { %v329_v56 = vadd.f32 %v295_v55, %v265_v52 }
  0xdb   : > { %347 = vst.msk [vmem:[%s1023_s4 + $0x38] sm:$0xff] %vm194_vm0, %v330_v54 }
  0xdc   : > { %346 = vst.msk [vmem:[%s1023_s4 + $0x30] sm:$0xff] %vm194_vm0, %v329_v56  ;;  %v304_v59 = vpop.xlane.xlu1 %303 }
  0xdd   : > { %v332_v60 = vadd.f32 %v304_v59, %v268_v57  ;;  %v301_v61 = vpop.xlane.xlu0 %300 }
  0xde   : > { %v331_v62 = vadd.f32 %v301_v61, %v267_v58 }
  0xdf   : > { %349 = vst.msk [vmem:[%s1023_s4 + $0x48] sm:$0xff] %vm194_vm0, %v332_v60 }
  0xe0   : > { %348 = vst.msk [vmem:[%s1023_s4 + $0x40] sm:$0xff] %vm194_vm0, %v331_v62  ;;  %v310_v1 = vpop.xlane.xlu1 %309 }
  0xe1   : > { %v334_v4 = vadd.f32 %v310_v1, %v270_v63  ;;  %v307_v5 = vpop.xlane.xlu0 %306 }
  0xe2   : > { %v333_v2 = vadd.f32 %v307_v5, %v269_v3 }
  0xe3   : > { %351 = vst.msk [vmem:[%s1023_s4 + $0x58] sm:$0xff] %vm194_vm0, %v334_v4 }
  0xe4   : > { %350 = vst.msk [vmem:[%s1023_s4 + $0x50] sm:$0xff] %vm194_vm0, %v333_v2  ;;  %v316_v8 = vpop.xlane.xlu1 %315 }
  0xe5   : > { %v336_v9 = vadd.f32 %v316_v8, %v272_v6  ;;  %v313_v10 = vpop.xlane.xlu0 %312 }
  0xe6   : > { %v335_v11 = vadd.f32 %v313_v10, %v271_v7 }
  0xe7   : > { %353 = vst.msk [vmem:[%s1023_s4 + $0x68] sm:$0xff] %vm194_vm0, %v336_v9 }
  0xe8   : > { %352 = vst.msk [vmem:[%s1023_s4 + $0x60] sm:$0xff] %vm194_vm0, %v335_v11  ;;  %v322_v14 = vpop.xlane.xlu1 %321 }
  0xe9   : > { %v338_v0 = vadd.f32 %v322_v14, %v274_v12  ;;  %v319_v15 = vpop.xlane.xlu0 %318 }
  0xea   : > { %v337_v16 = vadd.f32 %v319_v15, %v273_v13 }
  0xeb   : > { %355 = vst.msk [vmem:[%s1023_s4 + $0x78] sm:$0xff] %vm194_vm0, %v338_v0 }
  0xec   : > { %354 = vst.msk [vmem:[%s1023_s4 + $0x70] sm:$0xff] %vm194_vm0, %v337_v16  ;;  %v409_v19 = vpop.xlane.xlu1 %408 }
  0xed   : > { %v453_v20 = vadd.f32 %v409_v19, %v357_v17  ;;  %v406_v21 = vpop.xlane.xlu0 %405 }
  0xee   : > { %772 = shalt.err (!%p769_p5)
}
  0xef   : > { %s773_s29 = scalar_lea.hbm %s1328_s19, 2048  ;;  %s777_s15 = scalar_lea.hbm %s1472_s1, 4096 }
  0xf0   : > { %p774_p4 = scmp.ne.s32.totalorder %s1328_s19, %s773_s29  ;;  %p778_p12 = scmp.lt.u32.totalorder %s1328_s19, %s1472_s1 }
  0xf1   : > { %p779_p1 = scmp.lt.u32.totalorder %s777_s15, %s773_s29  ;;  %p781_p8 = scmp.lt.u32.totalorder %s773_s29, %s1328_s19 }
  0xf2   : > { %p775_p7 = pnand %p774_p4, %p1481_p9 }
  0xf3   : > { %p780_p3 = por %p779_p1, %p778_p12 }
  0xf4   : > { %p776_p10 = pneg %p775_p7 }
  0xf5   : > { %p782_p11 = por %p781_p8, %p780_p3 }
  0xf7   : > { %p783_p0 = pnand %p782_p11, %p776_p10 }
  0xf9   : > { %786 = shalt.err (!%p783_p0)
}
  0xfa   : > { %s880_s16 = smov 128   ;;  %s881_s18 = smov 8   ;;  %v452_v22 = vadd.f32 %v406_v21, %v356_v18  ;;  %v359_v23 = vld [vmem:[%s1195_s21 + $0x18] sm:$0xff]  ;;  %469 = vst.msk [vmem:[%s1195_s21 + $0x8] sm:$0xff] %vm194_vm0, %v453_v20  ;;  %v358_v24 = vld [vmem:[%s1195_s21 + $0x10] sm:$0xff]  ;;  %v415_v25 = vpop.xlane.xlu1 %414  ;;  %v412_v27 = vpop.xlane.xlu0 %411  ;;  %v361_v29 = vld [vmem:[%s1195_s21 + $0x28] sm:$0xff] }
  0xfb   : > { %659 = dma.vmem_to_hbm [thread:$0]  (%p1481_p9), %s1330_s6, 2048, %s1328_s19, %s485_s20, %s880_s16, %s880_s16, %s881_s18   ;;  %v455_v26 = vadd.f32 %v415_v25, %v359_v23  ;;  %v454_v28 = vadd.f32 %v412_v27, %v358_v24 }
  0xfc   : > { %468 = vst.msk [vmem:[%s1195_s21] sm:$0xff] %vm194_vm0, %v452_v22  ;;  %v360_v30 = vld [vmem:[%s1195_s21 + $0x20] sm:$0xff]  ;;  %v363_v35 = vld [vmem:[%s1195_s21 + $0x38] sm:$0xff]  ;;  %v362_v36 = vld [vmem:[%s1195_s21 + $0x30] sm:$0xff]  ;;  %s519_s6 = sshll.u32 %s1195_s21, 4  ;;  %s1413_s25 = scalar_lea.hbm %s1473_s2, %s655_s5  ;;  %s1415_s6 = int_to_ptr.vmem [resolvable:$true] %s519_s6 }
  0xfd   : > { %471 = vst.msk [vmem:[%s1195_s21 + $0x18] sm:$0xff] %vm194_vm0, %v455_v26  ;;  %470 = vst.msk [vmem:[%s1195_s21 + $0x10] sm:$0xff] %vm194_vm0, %v454_v28  ;;  %v365_v41 = vld [vmem:[%s1195_s21 + $0x48] sm:$0xff]  ;;  %v364_v42 = vld [vmem:[%s1195_s21 + $0x40] sm:$0xff]  ;;  %s490_s26 = scalar_lea.sflag [#allocation7], %s1010_s3  ;;  %s787_s27 = scalar_lea.vmem %s1415_s6, 2048 }
  0xfe   : > { %v421_v31 = vpop.xlane.xlu1 %420  ;;  %v418_v33 = vpop.xlane.xlu0 %417  ;;  %v367_v47 = vld [vmem:[%s1195_s21 + $0x58] sm:$0xff]  ;;  %v366_v48 = vld [vmem:[%s1195_s21 + $0x50] sm:$0xff]  ;;  %v369_v53 = vld [vmem:[%s1195_s21 + $0x68] sm:$0xff]  ;;  %p788_p6 = scmp.ne.s32.totalorder %s1415_s6, %s787_s27  ;;  %s882_s12 = smov [#allocation6]  }
  0xff   : > { %v457_v32 = vadd.f32 %v421_v31, %v361_v29  ;;  %v456_v34 = vadd.f32 %v418_v33, %v360_v30  ;;  %v368_v54 = vld [vmem:[%s1195_s21 + $0x60] sm:$0xff]  ;;  %v371_v59 = vld [vmem:[%s1195_s21 + $0x78] sm:$0xff]  ;;  %v370_v60 = vld [vmem:[%s1195_s21 + $0x70] sm:$0xff]  ;;  %s791_s28 = sshll.u32 %s882_s12, 4  ;;  %s792_s28 = int_to_ptr.vmem [resolvable:$false] %s791_s28 }
 0x100   : > { %p789_p13 = pnand %p788_p6, %p1481_p9  ;;  %s793_s5 = scalar_lea.vmem %s792_s28, 4096 }
 0x101   : > { %473 = vst.msk [vmem:[%s1195_s21 + $0x28] sm:$0xff] %vm194_vm0, %v457_v32  ;;  %472 = vst.msk [vmem:[%s1195_s21 + $0x20] sm:$0xff] %vm194_vm0, %v456_v34  ;;  %p794_p5 = scmp.lt.s32.totalorder %s1415_s6, %s792_s28  ;;  %p795_p4 = scmp.lt.s32.totalorder %s793_s5, %s787_s27 }
 0x102   : > { %v427_v37 = vpop.xlane.xlu1 %426  ;;  %v424_v39 = vpop.xlane.xlu0 %423  ;;  %p790_p2 = pneg %p789_p13 }
 0x103   : > { %v459_v38 = vadd.f32 %v427_v37, %v363_v35  ;;  %v458_v40 = vadd.f32 %v424_v39, %v362_v36  ;;  %p796_p7 = por %p795_p4, %p794_p5 }
 0x105   : > { %475 = vst.msk [vmem:[%s1195_s21 + $0x38] sm:$0xff] %vm194_vm0, %v459_v38  ;;  %474 = vst.msk [vmem:[%s1195_s21 + $0x30] sm:$0xff] %vm194_vm0, %v458_v40  ;;  %p797_p10 = pnand %p796_p7, %p790_p2 }
 0x106   : > { %v433_v43 = vpop.xlane.xlu1 %432  ;;  %v430_v45 = vpop.xlane.xlu0 %429 }
 0x107   : > { %v461_v44 = vadd.f32 %v433_v43, %v365_v41  ;;  %v460_v46 = vadd.f32 %v430_v45, %v364_v42 }
 0x109   : > { %477 = vst.msk [vmem:[%s1195_s21 + $0x48] sm:$0xff] %vm194_vm0, %v461_v44  ;;  %476 = vst.msk [vmem:[%s1195_s21 + $0x40] sm:$0xff] %vm194_vm0, %v460_v46 }
 0x10a   : > { %v439_v49 = vpop.xlane.xlu1 %438  ;;  %v436_v51 = vpop.xlane.xlu0 %435 }
 0x10b   : > { %v463_v50 = vadd.f32 %v439_v49, %v367_v47  ;;  %v462_v52 = vadd.f32 %v436_v51, %v366_v48 }
 0x10d   : > { %479 = vst.msk [vmem:[%s1195_s21 + $0x58] sm:$0xff] %vm194_vm0, %v463_v50  ;;  %478 = vst.msk [vmem:[%s1195_s21 + $0x50] sm:$0xff] %vm194_vm0, %v462_v52 }
 0x10e   : > { %v445_v55 = vpop.xlane.xlu1 %444  ;;  %v442_v57 = vpop.xlane.xlu0 %441 }
 0x10f   : > { %v465_v56 = vadd.f32 %v445_v55, %v369_v53  ;;  %v464_v58 = vadd.f32 %v442_v57, %v368_v54 }
 0x111   : > { %481 = vst.msk [vmem:[%s1195_s21 + $0x68] sm:$0xff] %vm194_vm0, %v465_v56  ;;  %480 = vst.msk [vmem:[%s1195_s21 + $0x60] sm:$0xff] %vm194_vm0, %v464_v58 }
 0x112   : > { %v451_v61 = vpop.xlane.xlu1 %450  ;;  %v448_v63 = vpop.xlane.xlu0 %447 }
 0x113   : > { %v467_v62 = vadd.f32 %v451_v61, %v371_v59  ;;  %v466_v3 = vadd.f32 %v448_v63, %v370_v60 }
 0x115   : > { %483 = vst.msk [vmem:[%s1195_s21 + $0x78] sm:$0xff] %vm194_vm0, %v467_v62  ;;  %482 = vst.msk [vmem:[%s1195_s21 + $0x70] sm:$0xff] %vm194_vm0, %v466_v3 }
 0x116   : > { %800 = shalt.err (!%p797_p10)
}
 0x117   : > { %s801_s21 = scalar_lea.hbm %s1413_s25, 2048  ;;  %s805_s8 = scalar_lea.hbm %s1473_s2, 4096 }
 0x118   : > { %p802_p12 = scmp.ne.s32.totalorder %s1413_s25, %s801_s21  ;;  %p806_p8 = scmp.lt.u32.totalorder %s1413_s25, %s1473_s2 }
 0x119   : > { %p807_p11 = scmp.lt.u32.totalorder %s805_s8, %s801_s21  ;;  %p809_p6 = scmp.lt.u32.totalorder %s801_s21, %s1413_s25 }
 0x11a   : > { %p803_p1 = pnand %p802_p12, %p1481_p9 }
 0x11b   : > { %p808_p0 = por %p807_p11, %p806_p8 }
 0x11c   : > { %p804_p3 = pneg %p803_p1 }
 0x11d   : > { %p810_p13 = por %p809_p6, %p808_p0 }
 0x11f   : > { %p811_p2 = pnand %p810_p13, %p804_p3 }
 0x121   : > { %814 = shalt.err (!%p811_p2)
}
 0x122   : > { %660 = dma.vmem_to_hbm [thread:$0]  (%p1481_p9), %s1415_s6, 2048, %s1413_s25, %s490_s26, %s880_s16, %s880_s16, %s881_s18  }
 0x123 PF: > { %s534_s4 = sand.u32 1, %s853_s9   ;;  %p1482_p5 = scmp.ne.s32.totalorder %s1478_s24, 0 }
 0x124   : > { %p1483_p4 = scmp.ge.s32.totalorder %s873_s14, 2  ;;  %s535_s19 = scalar_lea.sflag [#allocation4], %s534_s4 }
 0x126   : > { %p668_p7 = pnand %p1483_p4, %p1482_p5 }
 0x128   : > { %844 = dma.done.wait (!%p668_p7), %s535_s19, 2048  }
 0x129   : > { %846 = vsyncadd (!%p668_p7), %s535_s19, 4294965248  ;;  %s544_s22 = scalar_lea.sflag [#allocation7], %s534_s4 }
 0x12a   : > { %848 = dma.done.wait (!%p668_p7), %s544_s22, 2048  }
 0x12b   : > { %850 = vsyncadd (!%p668_p7), %s544_s22, 4294965248  ;;  %s22_s14 = sadd.s32 1, %s873_s14   ;;  %s1484_s9 = smov %s857_s10 }
 0x12c   : > { %p19_p10 = scmp.ge.s32.totalorder %s22_s14, 4   ;;  %s1485_s10 = smov %s861_s11 }
 0x12d   : > { %s1486_s11 = smov %s954_s23  ;;  %s1487_s12 = smov %s869_s13 }
 0x12e   : > { %s1488_s13 = smov %s1490_s17  ;;  %21 = sbr.rel (!%p19_p10) target bundleno = 8 (0x8), region = 90 }
 0x135   :  { %549 = vsyncpa [#allocation3], 1 }
 0x136   :  { %551 = vsyncpa [#allocation3 + $0x1], 1 }
 0x137   :  { %552 = vsyncpa [#allocation4], 1 }
 0x138   :  { %554 = vsyncpa [#allocation4 + $0x1], 1 }
 0x139   :  { %555 = vsyncpa [#allocation7], 1 }
 0x13a   :  { %557 = vsyncpa [#allocation7 + $0x1], 1 }

</bundles_post_ra>
